<compile_context>
chip_gen: v6e
topology: v6e:2x2x1
jax: 0.10.0
libtpu: 0.0.40
codegen_flags: <defaults>
</compile_context>

<pallas_src>
import random
from functools import partial

import jax
import jax.numpy as jnp
from jax.experimental import pallas as pl
from jax.experimental.pallas import tpu as pltpu


def _repeat_kernel(x_ref, o_ref, *, S, D, r, xp):
    # One grid step fills a lane-dense (B, S*r, D*xp) slab of the output with
    # r row-repeats x xp lane-repeats of the resident input tile.  All slices
    # are static, so this unrolls into full-width vector stores (preferred
    # over one giant broadcast+reshape, esp. on v5e's single vst slot).
    xv = x_ref[...]
    for rr in range(r):
        for k in range(xp):
            o_ref[:, rr * S:(rr + 1) * S, k * D:(k + 1) * D] = xv


def god_transform(x: jax.Array, yp: int, xp: int,
                  *, block_budget_bytes: int = 6 * 1024 * 1024) -> jax.Array:
    """Pallas equivalent of torch `x.repeat(1, yp, xp)` for 3-D x of shape (B, S, D)."""
    B, S, D = x.shape
    itemsize = jnp.dtype(x.dtype).itemsize
    # Sublane alignment for the second-to-last block dim (f32: 8, bf16: 16, int8: 32).
    sublane = 8 * max(1, 4 // itemsize)

    total_out_bytes = B * S * yp * D * xp * itemsize
    row_block_bytes = B * S * D * xp * itemsize      # one (B, S, D*xp) slab

    # Pick r = number of yp row-repeats folded into each output block:
    #   * r divides yp (no partial blocks),
    #   * S*r is sublane-aligned (or equals the full S*yp dim),
    #   * block stays within the VMEM budget,
    #   * keep >=2 grid steps for multi-TC chips unless the output is tiny.
    candidates = [c for c in range(1, yp + 1)
                  if yp % c == 0 and ((S * c) % sublane == 0 or c == yp)]
    r = candidates[0]  # smallest legal block as a fallback
    for c in candidates:
        if c * row_block_bytes > block_budget_bytes:
            continue
        if (yp // c) < 2 and yp >= 2 and total_out_bytes > (1 << 20):
            continue
        r = c
    n_steps = yp // r

    # VMEM budget: double-buffered input block + double-buffered output block.
    in_bytes = B * S * D * itemsize
    out_block_bytes = B * S * r * D * xp * itemsize
    vmem_limit = max(32 * 1024 * 1024,
                     2 * in_bytes + 2 * out_block_bytes + (1 << 20))
    vmem_limit = min(vmem_limit, 64 * 1024 * 1024)

    return pl.pallas_call(
        partial(_repeat_kernel, S=S, D=D, r=r, xp=xp),
        out_shape=jax.ShapeDtypeStruct((B, S * yp, D * xp), x.dtype),
        grid=(n_steps,),
        # Input: whole array as the block at a constant index -> stays
        # resident in VMEM across the grid (fetched once).
        in_specs=[pl.BlockSpec((B, S, D), lambda j: (0, 0, 0))],
        # Output: contiguous, lane-dense (B, S*r, D*xp) row slabs; consecutive
        # steps write consecutive row ranges (unit-stride HBM writeback).
        out_specs=pl.BlockSpec((B, S * r, D * xp), lambda j: (0, j, 0)),
        compiler_params=pltpu.CompilerParams(
            dimension_semantics=("parallel",),
            vmem_limit_bytes=int(vmem_limit),
        ),
    )(x)


if __name__ == "__main__":
    # Deterministic stand-ins for randint(1, 6) in the torch module.
    rng = random.Random(0)
    xp = rng.randint(1, 6)
    yp = rng.randint(1, 6)

    # Small shapes consistent with a 3-D input; (S, D) is (8, 128)-aligned.
    B, S, D = 2, 8, 128
    key = jax.random.PRNGKey(0)
    x = jax.random.normal(key, (B, S, D), dtype=jnp.float32)

    out = jax.block_until_ready(god_transform(x, yp, xp))

    # Reference check: jnp.tile == torch .repeat(1, yp, xp) for a 3-D tensor.
    ref = jnp.tile(x, (1, yp, xp))
    assert out.shape == (B, S * yp, D * xp), out.shape
    assert jnp.array_equal(out, ref), "mismatch vs reference jnp.tile"

    print("KERNEL_OK")
</pallas_src>

<mosaic_0001>
module attributes {stable_mosaic.version = 11 : i64} {
  func.func @_repeat_kernel(%arg0: i32, %arg1: memref<2x8x128xf32, #tpu.memory_space<vmem>>, %arg2: memref<2x32x512xf32, #tpu.memory_space<vmem>>) attributes {dimension_semantics = [#tpu.dimension_semantics<parallel>], iteration_bounds = array<i64: 1>, scalar_prefetch = 0 : i64, scratch_operands = 0 : i64, tpu.core_type = #tpu.core_type<tc>, window_params = [{pipeline_mode = #tpu.pipeline_mode<synchronous>, transform_indices = @transform_0, window_bounds = array<i64: 2, 8, 128>}, {transform_indices = @transform_1, window_bounds = array<i64: 2, 32, 512>}]} {
    %c0 = arith.constant 0 : index
    %c0_0 = arith.constant 0 : index
    %c0_1 = arith.constant 0 : index
    %0 = vector.load %arg1[%c0, %c0_0, %c0_1] : memref<2x8x128xf32, #tpu.memory_space<vmem>>, vector<2x8x128xf32>
    %c0_2 = arith.constant 0 : index
    %c0_3 = arith.constant 0 : index
    %c0_4 = arith.constant 0 : index
    %1 = vector.load %arg2[%c0_2, %c0_3, %c0_4] : memref<2x32x512xf32, #tpu.memory_space<vmem>>, vector<2x8x128xf32>
    tpu.vector_store %arg2[%c0_2, %c0_3, %c0_4], %0 {strides = array<i32>} : memref<2x32x512xf32, #tpu.memory_space<vmem>>, vector<2x8x128xf32>,
    %c0_5 = arith.constant 0 : index
    %c0_6 = arith.constant 0 : index
    %c128 = arith.constant 128 : index
    %2 = vector.load %arg2[%c0_5, %c0_6, %c128] : memref<2x32x512xf32, #tpu.memory_space<vmem>>, vector<2x8x128xf32>
    tpu.vector_store %arg2[%c0_5, %c0_6, %c128], %0 {strides = array<i32>} : memref<2x32x512xf32, #tpu.memory_space<vmem>>, vector<2x8x128xf32>,
    %c0_7 = arith.constant 0 : index
    %c0_8 = arith.constant 0 : index
    %c256 = arith.constant 256 : index
    %3 = vector.load %arg2[%c0_7, %c0_8, %c256] : memref<2x32x512xf32, #tpu.memory_space<vmem>>, vector<2x8x128xf32>
    tpu.vector_store %arg2[%c0_7, %c0_8, %c256], %0 {strides = array<i32>} : memref<2x32x512xf32, #tpu.memory_space<vmem>>, vector<2x8x128xf32>,
    %c0_9 = arith.constant 0 : index
    %c0_10 = arith.constant 0 : index
    %c384 = arith.constant 384 : index
    %4 = vector.load %arg2[%c0_9, %c0_10, %c384] : memref<2x32x512xf32, #tpu.memory_space<vmem>>, vector<2x8x128xf32>
    tpu.vector_store %arg2[%c0_9, %c0_10, %c384], %0 {strides = array<i32>} : memref<2x32x512xf32, #tpu.memory_space<vmem>>, vector<2x8x128xf32>,
    %c0_11 = arith.constant 0 : index
    %c8 = arith.constant 8 : index
    %c0_12 = arith.constant 0 : index
    %5 = vector.load %arg2[%c0_11, %c8, %c0_12] : memref<2x32x512xf32, #tpu.memory_space<vmem>>, vector<2x8x128xf32>
    tpu.vector_store %arg2[%c0_11, %c8, %c0_12], %0 {strides = array<i32>} : memref<2x32x512xf32, #tpu.memory_space<vmem>>, vector<2x8x128xf32>,
    %c0_13 = arith.constant 0 : index
    %c8_14 = arith.constant 8 : index
    %c128_15 = arith.constant 128 : index
    %6 = vector.load %arg2[%c0_13, %c8_14, %c128_15] : memref<2x32x512xf32, #tpu.memory_space<vmem>>, vector<2x8x128xf32>
    tpu.vector_store %arg2[%c0_13, %c8_14, %c128_15], %0 {strides = array<i32>} : memref<2x32x512xf32, #tpu.memory_space<vmem>>, vector<2x8x128xf32>,
    %c0_16 = arith.constant 0 : index
    %c8_17 = arith.constant 8 : index
    %c256_18 = arith.constant 256 : index
    %7 = vector.load %arg2[%c0_16, %c8_17, %c256_18] : memref<2x32x512xf32, #tpu.memory_space<vmem>>, vector<2x8x128xf32>
    tpu.vector_store %arg2[%c0_16, %c8_17, %c256_18], %0 {strides = array<i32>} : memref<2x32x512xf32, #tpu.memory_space<vmem>>, vector<2x8x128xf32>,
    %c0_19 = arith.constant 0 : index
    %c8_20 = arith.constant 8 : index
    %c384_21 = arith.constant 384 : index
    %8 = vector.load %arg2[%c0_19, %c8_20, %c384_21] : memref<2x32x512xf32, #tpu.memory_space<vmem>>, vector<2x8x128xf32>
    tpu.vector_store %arg2[%c0_19, %c8_20, %c384_21], %0 {strides = array<i32>} : memref<2x32x512xf32, #tpu.memory_space<vmem>>, vector<2x8x128xf32>,
    %c0_22 = arith.constant 0 : index
    %c16 = arith.constant 16 : index
    %c0_23 = arith.constant 0 : index
    %9 = vector.load %arg2[%c0_22, %c16, %c0_23] : memref<2x32x512xf32, #tpu.memory_space<vmem>>, vector<2x8x128xf32>
    tpu.vector_store %arg2[%c0_22, %c16, %c0_23], %0 {strides = array<i32>} : memref<2x32x512xf32, #tpu.memory_space<vmem>>, vector<2x8x128xf32>,
    %c0_24 = arith.constant 0 : index
    %c16_25 = arith.constant 16 : index
    %c128_26 = arith.constant 128 : index
    %10 = vector.load %arg2[%c0_24, %c16_25, %c128_26] : memref<2x32x512xf32, #tpu.memory_space<vmem>>, vector<2x8x128xf32>
    tpu.vector_store %arg2[%c0_24, %c16_25, %c128_26], %0 {strides = array<i32>} : memref<2x32x512xf32, #tpu.memory_space<vmem>>, vector<2x8x128xf32>,
    %c0_27 = arith.constant 0 : index
    %c16_28 = arith.constant 16 : index
    %c256_29 = arith.constant 256 : index
    %11 = vector.load %arg2[%c0_27, %c16_28, %c256_29] : memref<2x32x512xf32, #tpu.memory_space<vmem>>, vector<2x8x128xf32>
    tpu.vector_store %arg2[%c0_27, %c16_28, %c256_29], %0 {strides = array<i32>} : memref<2x32x512xf32, #tpu.memory_space<vmem>>, vector<2x8x128xf32>,
    %c0_30 = arith.constant 0 : index
    %c16_31 = arith.constant 16 : index
    %c384_32 = arith.constant 384 : index
    %12 = vector.load %arg2[%c0_30, %c16_31, %c384_32] : memref<2x32x512xf32, #tpu.memory_space<vmem>>, vector<2x8x128xf32>
    tpu.vector_store %arg2[%c0_30, %c16_31, %c384_32], %0 {strides = array<i32>} : memref<2x32x512xf32, #tpu.memory_space<vmem>>, vector<2x8x128xf32>,
    %c0_33 = arith.constant 0 : index
    %c24 = arith.constant 24 : index
    %c0_34 = arith.constant 0 : index
    %13 = vector.load %arg2[%c0_33, %c24, %c0_34] : memref<2x32x512xf32, #tpu.memory_space<vmem>>, vector<2x8x128xf32>
    tpu.vector_store %arg2[%c0_33, %c24, %c0_34], %0 {strides = array<i32>} : memref<2x32x512xf32, #tpu.memory_space<vmem>>, vector<2x8x128xf32>,
    %c0_35 = arith.constant 0 : index
    %c24_36 = arith.constant 24 : index
    %c128_37 = arith.constant 128 : index
    %14 = vector.load %arg2[%c0_35, %c24_36, %c128_37] : memref<2x32x512xf32, #tpu.memory_space<vmem>>, vector<2x8x128xf32>
    tpu.vector_store %arg2[%c0_35, %c24_36, %c128_37], %0 {strides = array<i32>} : memref<2x32x512xf32, #tpu.memory_space<vmem>>, vector<2x8x128xf32>,
    %c0_38 = arith.constant 0 : index
    %c24_39 = arith.constant 24 : index
    %c256_40 = arith.constant 256 : index
    %15 = vector.load %arg2[%c0_38, %c24_39, %c256_40] : memref<2x32x512xf32, #tpu.memory_space<vmem>>, vector<2x8x128xf32>
    tpu.vector_store %arg2[%c0_38, %c24_39, %c256_40], %0 {strides = array<i32>} : memref<2x32x512xf32, #tpu.memory_space<vmem>>, vector<2x8x128xf32>,
    %c0_41 = arith.constant 0 : index
    %c24_42 = arith.constant 24 : index
    %c384_43 = arith.constant 384 : index
    %16 = vector.load %arg2[%c0_41, %c24_42, %c384_43] : memref<2x32x512xf32, #tpu.memory_space<vmem>>, vector<2x8x128xf32>
    tpu.vector_store %arg2[%c0_41, %c24_42, %c384_43], %0 {strides = array<i32>} : memref<2x32x512xf32, #tpu.memory_space<vmem>>, vector<2x8x128xf32>,
    return
  }
  func.func @transform_0(%arg0: i32) -> (i32, i32, i32) {
    %c0_i32 = arith.constant 0 : i32
    %c0_i32_0 = arith.constant 0 : i32
    %c0_i32_1 = arith.constant 0 : i32
    %c0_i32_2 = arith.constant 0 : i32
    return %c0_i32, %c0_i32_0, %c0_i32_1 : i32, i32, i32
  }
  func.func @transform_1(%arg0: i32) -> (i32, i32, i32) {
    %c0_i32 = arith.constant 0 : i32
    %c0_i32_0 = arith.constant 0 : i32
    %c0_i32_1 = arith.constant 0 : i32
    return %c0_i32, %arg0, %c0_i32_0 : i32, i32, i32
  }
}

</mosaic_0001>

<bundles_post_ra>
// kernel: tpu_custom_call.1
= control target key start
LH: loop header
LB: loop body
LE: loop exit
PB: predicated region body
PF: predicated region fallthrough
CT: control target
= control target key end

     0   :  { %6 = vsyncpa [#allocation3], 0  ;;  %s153_s0 = inlined_call_operand.hbm [shape: f32[2,8,128], index: 0, kind: input, shape index: {}]   ;;  %s154_s1 = inlined_call_operand.hbm [shape: f32[2,32,512], index: 1, kind: output, shape index: {}]  }
   0x1   :  { %7 = vsyncpa [#allocation4], 0  ;;  %s124_s6 = smov [#allocation2]  }
   0x2   :  { %s13_s7 = sshll.u32 %s124_s6, 4  ;;  %s14_s7 = int_to_ptr.vmem [resolvable:$true] %s13_s7 }
   0x3   :  { %s88_s8 = scalar_lea.vmem %s14_s7, 256  ;;  %p93_p1 = scmp.lt.s32.totalorder %s14_s7, %s14_s7 }
   0x4   :  { %p89_p0 = scmp.ne.s32.totalorder %s14_s7, %s88_s8  ;;  %p94_p2 = scmp.lt.s32.totalorder %s88_s8, %s88_s8 }
   0x6   :  { %p95_p3 = por %p94_p2, %p93_p1 }
   0x8   :  { %p96_p4 = pnand %p95_p3, %p89_p0 }
   0xa   :  { %99 = shalt.err (!%p96_p4)
}
   0xb   :  { %s125_s9 = smov 128   ;;  %s126_s10 = smov 8  }
   0xc   :  { %19 = dma.hbm_to_vmem [thread:$0]  %s153_s0, 256, %s14_s7, [#allocation3], %s125_s9, %s125_s9, %s126_s10  }
   0xd   :  { %120 = dma.done.wait [#allocation3], 256  }
   0xe   :  { %121 = vsyncadd [#allocation3], 4294967040  ;;  %s127_s13 = smov [#allocation5]   ;;  %v23_v0 = vld [vmem:[#allocation2] sm:$0xff]  ;;  %v24_v1 = vld [vmem:[#allocation2 + $0x8] sm:$0xff] }
   0xf   :  { %s62_s14 = sshll.u32 %s127_s13, 4  ;;  %25 = vst [vmem:[#allocation5] sm:$0xff] %v23_v0  ;;  %27 = vst [vmem:[#allocation5 + $0x8] sm:$0xff] %v23_v0  ;;  %s143_s14 = int_to_ptr.vmem [resolvable:$true] %s62_s14 }
  0x10   :  { %29 = vst [vmem:[#allocation5 + $0x10] sm:$0xff] %v23_v0  ;;  %31 = vst [vmem:[#allocation5 + $0x18] sm:$0xff] %v23_v0  ;;  %s100_s0 = scalar_lea.vmem %s143_s14, 4096  ;;  %p105_p6 = scmp.lt.s32.totalorder %s143_s14, %s143_s14 }
  0x11   :  { %33 = vst [vmem:[#allocation5 + $0x20] sm:$0xff] %v23_v0  ;;  %35 = vst [vmem:[#allocation5 + $0x28] sm:$0xff] %v23_v0  ;;  %p101_p5 = scmp.ne.s32.totalorder %s143_s14, %s100_s0  ;;  %p106_p7 = scmp.lt.s32.totalorder %s100_s0, %s100_s0 }
  0x12   :  { %37 = vst [vmem:[#allocation5 + $0x30] sm:$0xff] %v23_v0  ;;  %39 = vst [vmem:[#allocation5 + $0x38] sm:$0xff] %v23_v0 }
  0x13   :  { %41 = vst [vmem:[#allocation5 + $0x40] sm:$0xff] %v23_v0  ;;  %43 = vst [vmem:[#allocation5 + $0x48] sm:$0xff] %v23_v0  ;;  %p107_p8 = por %p106_p7, %p105_p6 }
  0x14   :  { %45 = vst [vmem:[#allocation5 + $0x50] sm:$0xff] %v23_v0  ;;  %47 = vst [vmem:[#allocation5 + $0x58] sm:$0xff] %v23_v0 }
  0x15   :  { %49 = vst [vmem:[#allocation5 + $0x60] sm:$0xff] %v23_v0  ;;  %51 = vst [vmem:[#allocation5 + $0x68] sm:$0xff] %v23_v0  ;;  %p108_p9 = pnand %p107_p8, %p101_p5 }
  0x16   :  { %53 = vst [vmem:[#allocation5 + $0x70] sm:$0xff] %v23_v0  ;;  %55 = vst [vmem:[#allocation5 + $0x78] sm:$0xff] %v23_v0 }
  0x17   :  { %26 = vst [vmem:[#allocation5 + $0x80] sm:$0xff] %v24_v1  ;;  %28 = vst [vmem:[#allocation5 + $0x88] sm:$0xff] %v24_v1 }
  0x18   :  { %30 = vst [vmem:[#allocation5 + $0x90] sm:$0xff] %v24_v1  ;;  %32 = vst [vmem:[#allocation5 + $0x98] sm:$0xff] %v24_v1 }
  0x19   :  { %34 = vst [vmem:[#allocation5 + $0xa0] sm:$0xff] %v24_v1  ;;  %36 = vst [vmem:[#allocation5 + $0xa8] sm:$0xff] %v24_v1 }
  0x1a   :  { %38 = vst [vmem:[#allocation5 + $0xb0] sm:$0xff] %v24_v1  ;;  %40 = vst [vmem:[#allocation5 + $0xb8] sm:$0xff] %v24_v1 }
  0x1b   :  { %42 = vst [vmem:[#allocation5 + $0xc0] sm:$0xff] %v24_v1  ;;  %44 = vst [vmem:[#allocation5 + $0xc8] sm:$0xff] %v24_v1 }
  0x1c   :  { %46 = vst [vmem:[#allocation5 + $0xd0] sm:$0xff] %v24_v1  ;;  %48 = vst [vmem:[#allocation5 + $0xd8] sm:$0xff] %v24_v1 }
  0x1d   :  { %50 = vst [vmem:[#allocation5 + $0xe0] sm:$0xff] %v24_v1  ;;  %52 = vst [vmem:[#allocation5 + $0xe8] sm:$0xff] %v24_v1 }
  0x1e   :  { %54 = vst [vmem:[#allocation5 + $0xf0] sm:$0xff] %v24_v1  ;;  %56 = vst [vmem:[#allocation5 + $0xf8] sm:$0xff] %v24_v1 }
  0x1f   :  { %111 = shalt.err (!%p108_p9)
}
  0x20   :  { %s128_s15 = smov 512   ;;  %s129_s16 = smov 32  }
  0x21   :  { %68 = dma.vmem_to_hbm [thread:$0]  %s143_s14, 4096, %s154_s1, [#allocation4], %s128_s15, %s128_s15, %s129_s16  }
  0x22   :  { %122 = dma.done.wait [#allocation4], 4096  }
  0x23   :  { %123 = vsyncadd [#allocation4], 4294963200 }
  0x24   :  { %72 = vsyncpa [#allocation3], 1 }
  0x25   :  { %73 = vsyncpa [#allocation4], 1 }

</bundles_post_ra>
